<compile_context>
chip_gen: v7x
topology: tpu7x:2x2x1
jax: 0.10.0
libtpu: 0.0.40
codegen_flags: <defaults>
</compile_context>

<pallas_src>
import functools

import jax
import jax.numpy as jnp
from jax.experimental import pallas as pl
from jax.experimental.pallas import tpu as pltpu


def _pos_encoding_kernel(x_ref, w_ref, pos_ref, o_ref):
    # x_ref:   (Bt, ch_input, d_patch)        unpadded patch rows
    # w_ref:   (d_patch, d_model)             linear weight (pre-transposed)
    # pos_ref: (ch_input + 1, d_model) f32    positional; bias folded into rows 1:
    # o_ref:   (Bt, ch_input + 1, d_model)
    bt, n, dp = x_ref.shape
    dm = o_ref.shape[-1]

    # One flattened 2-D MXU matmul (M = Bt * ch_input), f32 accumulation.
    x2 = x_ref[...].reshape(bt * n, dp)
    y = jnp.dot(x2, w_ref[...], preferred_element_type=jnp.float32)
    y = y.reshape(bt, n, dm)

    pos = pos_ref[...]  # already f32

    # Rows 1..n of every batch element: projected patches + (positional + bias).
    # Lane-dense (full 128-lane) store with a static sublane offset of 1.
    o_ref[:, 1:, :] = (y + pos[1:, :][None, :, :]).astype(o_ref.dtype)

    # Row 0 (CLS slot): F.pad inserted exact zeros *after* the linear, so the
    # result is just positional[0] (the bias was deliberately NOT folded here).
    o_ref[:, 0:1, :] = jnp.broadcast_to(
        pos[0:1, :][None, :, :], (bt, 1, dm)).astype(o_ref.dtype)

    # TODO(synk): training-mode dropout would use pltpu.prng_seed /
    # pltpu.prng_random_bits here; in eval/inference mode dropout is identity.


def _pick_batch_tile(batch, max_bt=16):
    """Largest divisor of `batch` <= max_bt that still leaves >= 2 grid steps
    (so the pipeline has steps to overlap and both v7x TensorCores get work).
    Falls back to a single step only when unavoidable (e.g. batch == 1)."""
    for bt in range(min(batch, max_bt), 0, -1):
        if batch % bt == 0 and batch // bt >= 2:
            return bt
    return batch


@functools.partial(jax.jit, static_argnames=("out_dtype",))
def positional_encoding(x, w, b, positional, *, out_dtype=None):
    """Forward pass of PositionalEncoding (dropout = identity / eval mode).

    x:          (batch, ch_input, d_patch)
    w:          (d_patch, d_model)   -- torch nn.Linear weight, transposed
    b:          (d_model,)           -- torch nn.Linear bias
    positional: (ch_input + 1, d_model)
    returns:    (batch, ch_input + 1, d_model) in `out_dtype` (default x.dtype)
    """
    batch, ch_input, d_patch = x.shape
    d_model = w.shape[1]
    assert positional.shape == (ch_input + 1, d_model)
    out_dtype = out_dtype or x.dtype

    # Fold the bias into rows 1.. of the positional table (row 0 is the CLS
    # slot: exact zeros + positional[0], no bias).  Tiny one-off parameter op;
    # removes one DMA'd operand and one elementwise add per grid step.
    pos_pb = positional.astype(jnp.float32).at[1:].add(b.astype(jnp.float32))

    bt = _pick_batch_tile(batch)
    grid = (batch // bt,)

    # Explicit scoped-VMEM budget: double-buffered x/out blocks plus the
    # (revisited, still double-buffered by default) parameter blocks.
    x_bytes = bt * ch_input * d_patch * x.dtype.itemsize
    o_bytes = bt * (ch_input + 1) * d_model * jnp.dtype(out_dtype).itemsize
    w_bytes = d_patch * d_model * w.dtype.itemsize
    p_bytes = (ch_input + 1) * d_model * 4
    vmem_need = 2 * (x_bytes + o_bytes + w_bytes + p_bytes)
    vmem_limit = int(min(max(3 * vmem_need, 16 * 2**20), 48 * 2**20))

    return pl.pallas_call(
        _pos_encoding_kernel,
        out_shape=jax.ShapeDtypeStruct((batch, ch_input + 1, d_model), out_dtype),
        grid_spec=pltpu.PrefetchScalarGridSpec(
            num_scalar_prefetch=0,
            grid=grid,
            in_specs=[
                # Bt batch elements per grid step (x read from HBM exactly once).
                pl.BlockSpec((bt, ch_input, d_patch), lambda i: (i, 0, 0)),
                # Constant index_maps: fetched once, reused every step.
                pl.BlockSpec((d_patch, d_model), lambda i: (0, 0)),
                pl.BlockSpec((ch_input + 1, d_model), lambda i: (0, 0)),
            ],
            out_specs=pl.BlockSpec((bt, ch_input + 1, d_model),
                                   lambda i: (i, 0, 0)),
        ),
        compiler_params=pltpu.CompilerParams(
            dimension_semantics=("parallel",),
            vmem_limit_bytes=vmem_limit),
    )(x, w, pos_pb)


if __name__ == "__main__":
    # Small ViT-like shapes: x is (batch, ch_input, d_patch); d_model = 128 so
    # every store is lane-dense.  batch=8 -> Bt=4, grid=(2,).
    batch, ch_input, d_patch, d_model = 8, 16, 64, 128

    key = jax.random.PRNGKey(0)
    kx, kw, kb, kp = jax.random.split(key, 4)

    x = jax.random.normal(kx, (batch, ch_input, d_patch), dtype=jnp.float32)
    # torch nn.Linear stores weight as (d_model, d_patch); kept pre-transposed
    # here so the kernel computes x @ W.
    w = jax.random.normal(kw, (d_patch, d_model), dtype=jnp.float32) * 0.02
    b = jax.random.normal(kb, (d_model,), dtype=jnp.float32) * 0.02
    positional = jax.random.normal(
        kp, (ch_input + 1, d_model), dtype=jnp.float32) * 0.02

    # Plain-JAX reference (dropout = identity in eval mode).
    lin = jnp.dot(x, w, preferred_element_type=jnp.float32) + b
    ref = jnp.pad(lin, ((0, 0), (1, 0), (0, 0))) + positional

    # f32 path.
    y = positional_encoding(x, w, b, positional)
    jax.block_until_ready(y)
    assert y.shape == (batch, ch_input + 1, d_model)
    assert jnp.allclose(y, ref, atol=1e-4, rtol=1e-4), "f32 mismatch vs reference"

    # bf16-operand path (halved x/out HBM bytes, full-rate MXU on v6e/v7x);
    # f32 accumulation + f32 positional add inside the kernel, bf16 output.
    y_bf16 = positional_encoding(
        x.astype(jnp.bfloat16), w.astype(jnp.bfloat16), b, positional)
    jax.block_until_ready(y_bf16)
    assert y_bf16.dtype == jnp.bfloat16
    assert jnp.allclose(y_bf16.astype(jnp.float32), ref, atol=5e-2, rtol=5e-2), \
        "bf16 mismatch vs reference"

    print("KERNEL_OK")
</pallas_src>

<mosaic_0001>
module attributes {stable_mosaic.version = 11 : i64} {
  func.func @_pos_encoding_kernel(%arg0: i32, %arg1: memref<4x16x64xf32, #tpu.memory_space<vmem>>, %arg2: memref<64x128xf32, #tpu.memory_space<vmem>>, %arg3: memref<17x128xf32, #tpu.memory_space<vmem>>, %arg4: memref<4x17x128xf32, #tpu.memory_space<vmem>>) attributes {dimension_semantics = [#tpu.dimension_semantics<parallel>], iteration_bounds = array<i64: 2>, scalar_prefetch = 0 : i64, scratch_operands = 0 : i64, tpu.core_type = #tpu.core_type<tc>, window_params = [{transform_indices = @transform_0, window_bounds = array<i64: 4, 16, 64>}, {pipeline_mode = #tpu.pipeline_mode<synchronous>, transform_indices = @transform_1, window_bounds = array<i64: 64, 128>}, {pipeline_mode = #tpu.pipeline_mode<synchronous>, transform_indices = @transform_2, window_bounds = array<i64: 17, 128>}, {transform_indices = @transform_3, window_bounds = array<i64: 4, 17, 128>}]} {
    %c0 = arith.constant 0 : index
    %c0_0 = arith.constant 0 : index
    %c0_1 = arith.constant 0 : index
    %0 = vector.load %arg1[%c0, %c0_0, %c0_1] : memref<4x16x64xf32, #tpu.memory_space<vmem>>, vector<4x16x64xf32>
    %1 = vector.shape_cast %0 : vector<4x16x64xf32> to vector<64x64xf32>
    %c0_2 = arith.constant 0 : index
    %c0_3 = arith.constant 0 : index
    %2 = vector.load %arg2[%c0_2, %c0_3] : memref<64x128xf32, #tpu.memory_space<vmem>>, vector<64x128xf32>
    %cst = arith.constant dense<0.000000e+00> : vector<64x128xf32>
    %3 = tpu.matmul %1, %2, %cst {dimension_numbers = #tpu.dot_dimension_numbers<[1], [0], [0], [1], [0, 0, 1, 1], [], []>} : vector<64x64xf32>, vector<64x128xf32>, vector<64x128xf32> -> vector<64x128xf32>
    %4 = vector.shape_cast %3 : vector<64x128xf32> to vector<4x16x128xf32>
    %c0_4 = arith.constant 0 : index
    %c0_5 = arith.constant 0 : index
    %5 = vector.load %arg3[%c0_4, %c0_5] : memref<17x128xf32, #tpu.memory_space<vmem>>, vector<17x128xf32>
    %6 = vector.extract_strided_slice %5 {offsets = [1, 0], sizes = [16, 128], strides = [1, 1]} : vector<17x128xf32> to vector<16x128xf32>
    %7 = vector.shape_cast %6 : vector<16x128xf32> to vector<1x16x128xf32>
    %8 = vector.broadcast %7 : vector<1x16x128xf32> to vector<4x16x128xf32>
    %9 = arith.addf %4, %8 : vector<4x16x128xf32>
    %c0_6 = arith.constant 0 : index
    %c1 = arith.constant 1 : index
    %c0_7 = arith.constant 0 : index
    %10 = vector.load %arg4[%c0_6, %c1, %c0_7] : memref<4x17x128xf32, #tpu.memory_space<vmem>>, vector<4x16x128xf32>
    tpu.vector_store %arg4[%c0_6, %c1, %c0_7], %9 {strides = array<i32>} : memref<4x17x128xf32, #tpu.memory_space<vmem>>, vector<4x16x128xf32>,
    %11 = vector.extract_strided_slice %5 {offsets = [0, 0], sizes = [1, 128], strides = [1, 1]} : vector<17x128xf32> to vector<1x128xf32>
    %12 = vector.shape_cast %11 : vector<1x128xf32> to vector<1x1x128xf32>
    %13 = vector.shape_cast %12 : vector<1x1x128xf32> to vector<1x1x128xf32>
    %14 = vector.broadcast %13 : vector<1x1x128xf32> to vector<4x1x128xf32>
    %c0_8 = arith.constant 0 : index
    %c0_9 = arith.constant 0 : index
    %c0_10 = arith.constant 0 : index
    %15 = vector.load %arg4[%c0_8, %c0_9, %c0_10] : memref<4x17x128xf32, #tpu.memory_space<vmem>>, vector<4x1x128xf32>
    tpu.vector_store %arg4[%c0_8, %c0_9, %c0_10], %14 {strides = array<i32>} : memref<4x17x128xf32, #tpu.memory_space<vmem>>, vector<4x1x128xf32>,
    return
  }
  func.func @transform_0(%arg0: i32) -> (i32, i32, i32) {
    %c0_i32 = arith.constant 0 : i32
    %c0_i32_0 = arith.constant 0 : i32
    %c0_i32_1 = arith.constant 0 : i32
    return %arg0, %c0_i32, %c0_i32_0 : i32, i32, i32
  }
  func.func @transform_1(%arg0: i32) -> (i32, i32) {
    %c0_i32 = arith.constant 0 : i32
    %c0_i32_0 = arith.constant 0 : i32
    %c0_i32_1 = arith.constant 0 : i32
    return %c0_i32, %c0_i32_0 : i32, i32
  }
  func.func @transform_2(%arg0: i32) -> (i32, i32) {
    %c0_i32 = arith.constant 0 : i32
    %c0_i32_0 = arith.constant 0 : i32
    %c0_i32_1 = arith.constant 0 : i32
    return %c0_i32, %c0_i32_0 : i32, i32
  }
  func.func @transform_3(%arg0: i32) -> (i32, i32, i32) {
    %c0_i32 = arith.constant 0 : i32
    %c0_i32_0 = arith.constant 0 : i32
    %c0_i32_1 = arith.constant 0 : i32
    return %arg0, %c0_i32, %c0_i32_0 : i32, i32, i32
  }
}

</mosaic_0001>

<bundles_post_ra>
// kernel: positional_encoding.1
= control target key start
LH: loop header
LB: loop body
LE: loop exit
PB: predicated region body
PF: predicated region fallthrough
CT: control target
= control target key end

     0   :  { %8 = vsyncpa [#allocation3], 0  ;;  %s840_s0 = inlined_call_operand.hbm [shape: f32[8,16,64], index: 0, kind: input, shape index: {}]   ;;  %s841_s1 = inlined_call_operand.vmem [shape: f32[64,128], index: 1, kind: input, shape index: {}]   ;;  %s842_s2 = inlined_call_operand.vmem [shape: f32[17,128], index: 2, kind: input, shape index: {}]   ;;  %s843_s3 = inlined_call_operand.vmem [shape: f32[8,17,128], index: 3, kind: output, shape index: {}]  }
   0x1   :  { %10 = vsyncpa [#allocation3 + $0x1], 0  ;;  %s668_s12 = smov 0   ;;  %s670_s13 = smov 0  }
   0x2   :  { %s672_s14 = smov 0   ;;  %s674_s15 = smov 0  }
   0x3 LB: > { %s445_s16 = sadd.s32 4294967295, %s643_s15   ;;  %s688_s17 = sadd.s32 1, %s643_s15   ;;  %s643_s15 = sphi %s674_s15, %s850_s15   ;;  %s639_s14 = sphi %s672_s14, %s849_s14   ;;  %s635_s13 = sphi %s670_s13, %s848_s13   ;;  %s631_s12 = sphi %s668_s12, %s847_s12  }
   0x4   : > { %s20_s18 = ssub.s32 %s643_s15, %s688_s17  ;;  %s23_s19 = sadd.s32 1, %s639_s14 }
   0x5   : > { %p21_p0 = scmp.eq.s32.totalorder %s20_s18, 0  ;;  %p30_p1 = scmp.ne.s32.totalorder %s639_s14, %s635_s13 }
   0x6   : > { %p31_p2 = scmp.eq.s32.totalorder %s643_s15, 0  ;;  %p36_p3 = scmp.ne.s32.totalorder %s635_s13, %s631_s12 }
   0x7   : > { %s698_s20 = scalar_select %p21_p0, %s639_s14, %s23_s19  }
   0x8   : > { %p32_p4 = por %p31_p2, %p30_p1  ;;  %p37_p5 = scmp.eq.s32.totalorder %s445_s16, 0 }
   0x9   : > { %p544_p6 = scmp.lt.s32.totalorder %s643_s15, 2  ;;  %s134_s22 = sand.u32 1, %s639_s14  }
   0xa   : > { %p703_p7 = por %p37_p5, %p36_p3  ;;  %s449_s23 = sshll.u32 %s134_s22, 6 }
   0xb   : > { %s468_s24 = sshll.u32 %s643_s15, 10  ;;  %s138_s28 = scalar_lea.vmem [#allocation2], %s449_s23 }
   0xc   : > { %s712_s27 = scalar_lea.hbm %s840_s0, %s468_s24  ;;  %s146_s29 = sshll.u32 %s138_s28, 4  ;;  %s714_s29 = int_to_ptr.vmem [resolvable:$true] %s146_s29 }
   0xd   : > { %p716_p8 = pnand %p544_p6, %p32_p4  ;;  %s721_s4 = scalar_lea.sflag [#allocation3], %s134_s22 }
   0xe   : > { %s579_s5 = scalar_lea.hbm %s712_s27, 1024  ;;  %s584_s8 = scalar_lea.hbm %s840_s0, 2048 }
   0xf   : > { %p580_p10 = scmp.ne.s32.totalorder %s712_s27, %s579_s5  ;;  %p581_p11 = pneg %p716_p8 }
  0x10   : > { %p585_p0 = scmp.lt.u32.totalorder %s712_s27, %s840_s0  ;;  %p586_p1 = scmp.lt.u32.totalorder %s584_s8, %s579_s5 }
  0x11   : > { %p582_p12 = pnand %p581_p11, %p580_p10  ;;  %p588_p3 = scmp.lt.u32.totalorder %s579_s5, %s712_s27 }
  0x12   : > { %p587_p2 = por %p586_p1, %p585_p0 }
  0x13   : > { %p583_p13 = pneg %p582_p12 }
  0x14   : > { %p589_p4 = por %p588_p3, %p587_p2 }
  0x16   : > { %p590_p5 = pnand %p589_p4, %p583_p13 }
  0x18   : > { %593 = shalt.err (!%p590_p5)
}
  0x19   : > { %s594_s11 = scalar_lea.vmem %s714_s29, 1024  ;;  %s645_s12 = smov [#allocation2]  }
  0x1a   : > { %p595_p6 = scmp.ne.s32.totalorder %s714_s29, %s594_s11  ;;  %s599_s18 = sshll.u32 %s645_s12, 4  ;;  %s600_s18 = int_to_ptr.vmem [resolvable:$false] %s599_s18 }
  0x1b   : > { %s601_s19 = scalar_lea.vmem %s600_s18, 2048  ;;  %p602_p9 = scmp.lt.s32.totalorder %s714_s29, %s600_s18 }
  0x1c   : > { %p597_p10 = pnand %p595_p6, %p581_p11  ;;  %p603_p0 = scmp.lt.s32.totalorder %s601_s19, %s594_s11 }
  0x1e   : > { %p598_p12 = pneg %p597_p10  ;;  %p604_p1 = por %p603_p0, %p602_p9 }
  0x20   : > { %p605_p2 = pnand %p604_p1, %p598_p12 }
  0x22   : > { %608 = shalt.err (!%p605_p2)
}
  0x23   : > { %s646_s22 = smov 128   ;;  %s647_s23 = smov 8  }
  0x24   : > { %543 = dma.hbm_to_vmem [thread:$0]  (!%p716_p8), %s712_s27, 1024, %s714_s29, %s721_s4, %s646_s22, %s646_s22, %s647_s23  }
  0x25   : > { %p154_p11 = scmp.lt.s32.totalorder %s643_s15, 3  ;;  %p846_p13 = scmp.ge.s32.totalorder %s643_s15, 1 }
  0x27   : > { %p155_p3 = pnand %p846_p13, %p154_p11 }
  0x28   : > { %s160_s24 = sand.u32 (!%p155_p3), 1, %s635_s13  }
  0x29   : > { %158 = sbr.rel (%p155_p3) target bundleno = 288 (0x120), region = 32  ;;  %s454_s25 = sshll.u32 (!%p155_p3), %s160_s24, 6 }
  0x2a   : > { %s161_s26 = scalar_lea.sflag (!%p155_p3), [#allocation3], %s160_s24  ;;  %s753_s28 = scalar_lea.vmem (!%p155_p3), [#allocation2], %s454_s25 }
  0x30   : > { %626 = dma.done.wait (%p703_p7), %s161_s26, 1024  }
  0x31   : > { %628 = vsyncadd (%p703_p7), %s161_s26, 4294966272  ;;  %v204_v0 = vld [vmem:[%s841_s1] sm:$0xff]  ;;  %v205_v1 = vld [vmem:[%s841_s1 + $0x8] sm:$0xff]  ;;  %vm212_vm0 = vcmask 523264   ;;  %s455_s23 = sshll.u32 %s445_s16, 2  ;;  %vm348_vm1 = vcmask 1046528  }
  0x32   : > { %v206_v2 = vld [vmem:[%s841_s1 + $0x10] sm:$0xff]  ;;  %v513_v3 = vpack.c.bf16 %v205_v1, %v204_v0  ;;  %v207_v4 = vld [vmem:[%s841_s1 + $0x18] sm:$0xff]  ;;  %v208_v6 = vld [vmem:[%s841_s1 + $0x20] sm:$0xff]  ;;  %p190_p7 = scmp.lt.s32.totalorder %s455_s23, 7 }
  0x33   : > { %v517_v5 = vpack.c.bf16 %v207_v4, %v206_v2  ;;  %v209_v7 = vld [vmem:[%s841_s1 + $0x28] sm:$0xff]  ;;  %v196_v8 = vld [vmem:[%s753_s28] sm:$0xff]  ;;  %v210_v11 = vld [vmem:[%s841_s1 + $0x30] sm:$0xff] }
  0x34   : > { %514 = vmatprep.subr.bf16.mxu0 %v513_v3  ;;  %529 = vmatprep.subr.bf16.mxu1 %v513_v3  ;;  %v200_v9 = vld [vmem:[%s753_s28 + $0x20] sm:$0xff]  ;;  %v521_v10 = vpack.c.bf16 %v209_v7, %v208_v6  ;;  %v197_v14 = vld [vmem:[%s753_s28 + $0x8] sm:$0xff]  ;;  %v198_v16 = vld [vmem:[%s753_s28 + $0x10] sm:$0xff]  ;;  %s852_s23 = smov (!%p190_p7, %s455_s23), 7 }
  0x35   : > { %516 = vmatpush3.bf16.msra.mxu0 %v513_v3  ;;  %533 = vmatpush3.bf16.msra.mxu1 %v513_v3  ;;  %v211_v12 = vld [vmem:[%s841_s1 + $0x38] sm:$0xff]  ;;  %v201_v15 = vld [vmem:[%s753_s28 + $0x28] sm:$0xff]  ;;  %v202_v17 = vld [vmem:[%s753_s28 + $0x30] sm:$0xff]  ;;  %s537_s24 = smul.u32 24, %s852_s23 }
  0x36   : > { %518 = vmatprep.subr.bf16.mxu0 %v517_v5  ;;  %530 = vmatprep.subr.bf16.mxu1 %v517_v5  ;;  %v525_v13 = vpack.c.bf16 %v211_v12, %v210_v11  ;;  %v199_v18 = vld [vmem:[%s753_s28 + $0x18] sm:$0xff]  ;;  %v342_v20 = vld [vmem:[%s842_s2] sm:$0xff]  ;;  %v343_v21 = vld [vmem:[%s842_s2 + $0x8] sm:$0xff] }
  0x37   : > { %501 = vmatprep.mubr.msk.f32.mxu0 %vm212_vm0, %v196_v8  ;;  %507 = vmatprep.mubr.msk.f32.mxu1 %vm212_vm0, %v200_v9  ;;  %v203_v19 = vld [vmem:[%s753_s28 + $0x38] sm:$0xff]  ;;  %s804_s5 = scalar_lea.vmem %s843_s3, %s537_s24  ;;  %v350_v23 = vrot.slane %v343_v21, 1  ;;  %v349_v25 = vrot.slane %v342_v20, 1 }
  0x38   : > { %372 = vst [vmem:[%s804_s5] sm:$0x1] %v342_v20  ;;  %373 = vst [vmem:[%s804_s5 + $0x18] sm:$0x1] %v342_v20  ;;  %v344_v22 = vld [vmem:[%s842_s2 + $0x10] sm:$0x1] }
  0x39   : > { %520 = vmatpush3.bf16.msra.mxu0 %v517_v5  ;;  %534 = vmatpush3.bf16.msra.mxu1 %v517_v5  ;;  %374 = vst [vmem:[%s804_s5 + $0x30] sm:$0x1] %v342_v20  ;;  %375 = vst [vmem:[%s804_s5 + $0x48] sm:$0x1] %v342_v20  ;;  %v352_v24 = vrot.slane %v344_v22, 1  ;;  %v351_v27 = vsel %vm348_vm1, %v349_v25, %v350_v23 }
  0x3a   : > { %522 = vmatprep.subr.bf16.mxu0 %v521_v10  ;;  %531 = vmatprep.subr.bf16.mxu1 %v521_v10 }
  0x3b   : > { %v353_v26 = vsel %vm348_vm1, %v350_v23, %v352_v24 }
  0x3d   : > { %524 = vmatpush3.bf16.msra.mxu0 %v521_v10  ;;  %535 = vmatpush3.bf16.msra.mxu1 %v521_v10 }
  0x3e   : > { %526 = vmatprep.subr.bf16.mxu0 %v525_v13  ;;  %532 = vmatprep.subr.bf16.mxu1 %v525_v13 }
  0x41   : > { %528 = vmatpush3.bf16.msra.mxu0 %v525_v13  ;;  %536 = vmatpush3.bf16.msra.mxu1 %v525_v13 }
  0x44   : > { %502 = vmatmul.mubr.msk.f32.vlgmr.msra.gmra.mrb[0].mxu0 %vm212_vm0, %v197_v14  ;;  %508 = vmatmul.mubr.msk.f32.vlgmr.msra.gmra.mrb[0].mxu1 %vm212_vm0, %v201_v15 }
  0x45   : > { %504 = vmatprep.mubr.msk.f32.mxu0 %vm212_vm0, %v198_v16  ;;  %510 = vmatprep.mubr.msk.f32.mxu1 %vm212_vm0, %v202_v17 }
  0x48   : > { %505 = vmatmul.mubr.msk.f32.gmra.mrb[2].mxu0 %vm212_vm0, %v199_v18  ;;  %511 = vmatmul.mubr.msk.f32.gmra.mrb[2].mxu1 %vm212_vm0, %v203_v19 }
 0x117   : > { %v503_v28 = vpop.f32.mrb[0].mxu0  ;;  %v509_v29 = vpop.f32.mrb[0].mxu1 }
 0x118   : > { %v357_v30 = vadd.f32 %v503_v28, %v353_v26  ;;  %v303_v31 = vpop.f32.mrb[1].mxu0  ;;  %v323_v32 = vpop.f32.mrb[1].mxu1  ;;  %v361_v41 = vadd.f32 %v509_v29, %v353_v26 }
 0x119   : > { %v356_v33 = vadd.f32 %v351_v27, %v303_v31  ;;  %v360_v34 = vadd.f32 %v351_v27, %v323_v32 }
 0x11a   : > { %365 = vst [vmem:[%s804_s5 + $0x9] sm:$0xff] %v357_v30  ;;  %369 = vst [vmem:[%s804_s5 + $0x39] sm:$0xff] %v361_v41 }
 0x11b   : > { %364 = vst [vmem:[%s804_s5 + $0x1] sm:$0xff] %v356_v33  ;;  %v506_v35 = vpop.f32.mrb[2].mxu0  ;;  %v512_v36 = vpop.f32.mrb[2].mxu1  ;;  %368 = vst [vmem:[%s804_s5 + $0x31] sm:$0xff] %v360_v34 }
 0x11c   : > { %v359_v37 = vadd.f32 %v506_v35, %v353_v26  ;;  %v313_v38 = vpop.f32.mrb[3].mxu0  ;;  %v363_v39 = vadd.f32 %v512_v36, %v353_v26  ;;  %v333_v40 = vpop.f32.mrb[3].mxu1 }
 0x11d   : > { %v358_v42 = vadd.f32 %v351_v27, %v313_v38  ;;  %v362_v43 = vadd.f32 %v351_v27, %v333_v40 }
 0x11e   : > { %367 = vst [vmem:[%s804_s5 + $0x21] sm:$0xff] %v359_v37  ;;  %371 = vst [vmem:[%s804_s5 + $0x51] sm:$0xff] %v363_v39 }
 0x11f   : > { %366 = vst [vmem:[%s804_s5 + $0x19] sm:$0xff] %v358_v42  ;;  %370 = vst [vmem:[%s804_s5 + $0x49] sm:$0xff] %v362_v43 }
 0x120 PF: > { %p13_p8 = scmp.ge.s32.totalorder %s688_s17, 4   ;;  %s847_s12 = smov %s635_s13 }
 0x121   : > { %s848_s13 = smov %s639_s14  ;;  %s849_s14 = smov %s698_s20 }
 0x122   : > { %s850_s15 = smov %s688_s17  ;;  %15 = sbr.rel (!%p13_p8) target bundleno = 3 (0x3), region = 72 }
 0x129   :  { %400 = vsyncpa [#allocation3], 1 }
 0x12a   :  { %402 = vsyncpa [#allocation3 + $0x1], 1 }

</bundles_post_ra>
